<compile_context>
chip_gen: v5e
topology: v5e:2x2
jax: 0.10.0
libtpu: 0.0.40
codegen_flags: <defaults>
</compile_context>

<pallas_src>
import numpy as np
import jax
import jax.numpy as jnp
from jax.experimental import pallas as pl
from jax.experimental.pallas import tpu as pltpu


# --------------------------------------------------------------------------- #
# Pallas kernel: one lane-batched slab of graphs per grid step
# --------------------------------------------------------------------------- #
def _make_actor_kernel(eh, a):
    """eh = E_per*H (edge-message rows), a = number of actions (E_out + nf)."""

    def kernel(xa_ref, wall_ref, ball_ref, whh_ref, high_ref, out_ref):
        f32 = jnp.float32
        # px: (EH + 2A, Bblk) = [edge-msg preacts ; alpha x-part ; beta x-part]
        px = jnp.dot(wall_ref[...], xa_ref[...], preferred_element_type=f32)
        px = px + ball_ref[...]
        # EdgeConv layer-1 ReLU (per-edge hidden features, graphs on lanes)
        h1 = jnp.maximum(px[:eh, :], 0.0).astype(whh_ref.dtype)
        # Layer-2 (W2, b2) and the segment-sum aggregation are folded into
        # whh / ball in the wrapper, so one dot finishes both heads.
        logits = px[eh:, :] + jnp.dot(whh_ref[...], h1, preferred_element_type=f32)
        alpha = jax.nn.softplus(logits[:a, :] + 1e-20) + 1e-20
        beta = jax.nn.softplus(logits[a:, :] + 1e-20) + 1e-20
        # deterministic action = Beta mean * high ; lane-dense (A, Bblk) store
        out_ref[...] = (alpha / (alpha + beta)) * high_ref[...]

    return kernel


def _pick_lane_block(batch):
    """Graphs per grid step (multiple of 128 lanes)."""
    groups = max(1, -(-batch // 128))          # cdiv(B, 128)
    blk = min(groups, 4)                       # cap a step at 512 graphs (VMEM headroom, v7x 64MiB)
    if groups >= 2:                            # keep >=2 grid steps so both v7x TCs get work
        blk = min(blk, max(1, groups // 2))
    return blk * 128


# --------------------------------------------------------------------------- #
# Wrapper: folds the fixed topology + layer-2 + heads into packed weights
# --------------------------------------------------------------------------- #
def actor_forward_pallas(x, edge_index, edge_attr, params, *, edges, high,
                         nnodes, num_factories, node_size, hidden_dim,
                         matmul_dtype=jnp.float32):
    """Deterministic Actor forward. Returns (act of shape (B, E_out + nf), None)."""
    f32 = jnp.float32
    x = x.astype(f32)
    Ntot, ns = x.shape
    assert ns == node_size
    assert Ntot % nnodes == 0
    B = Ntot // nnodes
    H = hidden_dim
    nf = num_factories
    Fdim = ns + H

    # ---------- static topology (host side) + validation ----------
    ei_np = np.asarray(edge_index)
    E_total = ei_np.shape[1]
    assert E_total % B == 0
    E_per = E_total // B
    per = ei_np[:, :E_per].astype(np.int64)
    expected = np.concatenate([per + b * nnodes for b in range(B)], axis=1)
    if not np.array_equal(ei_np, expected):
        raise ValueError("edge_index must be B contiguous replicas of one "
                         "per-graph topology with node offsets b*nnodes")
    ei0, ei1 = per[0], per[1]

    edges_np = np.asarray(edges).astype(np.int64)
    E_out = edges_np.shape[0]
    A = E_out + nf
    high = jnp.asarray(high, f32).reshape(A)

    has_edge = (edge_attr is not None) and (edge_attr.shape[-1] > 0)
    es = int(edge_attr.shape[-1]) if has_edge else 0
    D_in = nnodes * ns + E_per * es
    EH = E_per * H

    # ---------- parameters ----------
    W1 = params["w1"].astype(f32)                         # (2ns+es, H)
    b1 = params["b1"].astype(f32).reshape(H)
    W2 = params["w2"].astype(f32)                         # (H, H)
    b2 = params["b2"].astype(f32).reshape(H)
    wmu = params["wmu"].astype(f32).reshape(2 * Fdim)
    wsig = params["wsig"].astype(f32).reshape(2 * Fdim)
    wmu2 = params["wmu2"].astype(f32).reshape(Fdim)
    wsig2 = params["wsig2"].astype(f32).reshape(Fdim)
    bmu = params["bmu"].astype(f32).reshape(())
    bsig = params["bsig"].astype(f32).reshape(())
    bmu2 = params["bmu2"].astype(f32).reshape(())
    bsig2 = params["bsig2"].astype(f32).reshape(())

    # ---------- constant selectors for the shared topology ----------
    eye_n = np.eye(nnodes, dtype=np.float32)
    sel_i = jnp.asarray(eye_n[ei0])                       # gather x_i = x[ei0]
    sel_j = jnp.asarray(eye_n[ei1])                       # gather x_j = x[ei1]
    agg_np = eye_n[ei0]                                   # scatter-add onto ei0
    deg = jnp.asarray(agg_np.sum(axis=0))                 # (nnodes,)
    one_s_np = eye_n[edges_np[:, 0]]                      # (E_out, nnodes)
    one_d_np = eye_n[edges_np[:, 1]]
    one_f_np = eye_n[np.arange(nnodes - nf, nnodes)]      # factory = last nf nodes
    gs = jnp.asarray(one_s_np @ agg_np.T)                 # (E_out, E_per): agg[e, src_a]
    gd = jnp.asarray(one_d_np @ agg_np.T)
    gf = jnp.asarray(one_f_np @ agg_np.T)                 # (nf, E_per)
    one_s, one_d, one_f = map(jnp.asarray, (one_s_np, one_d_np, one_f_np))

    # ---------- EdgeConv layer-1, hoisted into one dense per-graph map ----------
    W1i, W1j, W1e = W1[:ns], W1[ns:2 * ns], W1[2 * ns:]
    we1 = (jnp.einsum('en,fh->ehnf', sel_i, W1i)
           + jnp.einsum('en,fh->ehnf', sel_j, W1j)).reshape(EH, nnodes * ns)
    if has_edge:
        wea = jnp.einsum('eE,fh->ehEf', jnp.eye(E_per, dtype=f32),
                         W1e).reshape(EH, E_per * es)
        we1 = jnp.concatenate([we1, wea], axis=1)         # (EH, D_in)
    b1_col = jnp.tile(b1, E_per).reshape(EH, 1)

    # ---------- heads with W2 / b2 / aggregation algebraically folded ----------
    def fold_head(w_edge, w_fac, b_edge, b_fac):
        a_sx, a_sc = w_edge[:ns], w_edge[ns:Fdim]
        a_dx, a_dc = w_edge[Fdim:Fdim + ns], w_edge[Fdim + ns:]
        f_x, f_c = w_fac[:ns], w_fac[ns:]
        a_sc2, a_dc2, f_c2 = W2 @ a_sc, W2 @ a_dc, W2 @ f_c        # fold layer-2 weight
        c_s, c_d, c_f = b2 @ a_sc, b2 @ a_dc, b2 @ f_c             # fold layer-2 bias

        whx = jnp.concatenate([
            (jnp.einsum('an,f->anf', one_s, a_sx)
             + jnp.einsum('an,f->anf', one_d, a_dx)).reshape(E_out, nnodes * ns),
            jnp.einsum('kn,f->knf', one_f, f_x).reshape(nf, nnodes * ns)], axis=0)
        if has_edge:
            whx = jnp.concatenate([whx, jnp.zeros((A, E_per * es), f32)], axis=1)

        whh = jnp.concatenate([
            (jnp.einsum('ae,h->aeh', gs, a_sc2)
             + jnp.einsum('ae,h->aeh', gd, a_dc2)).reshape(E_out, EH),
            jnp.einsum('ke,h->keh', gf, f_c2).reshape(nf, EH)], axis=0)

        bias = jnp.concatenate([
            b_edge * jnp.ones((E_out,), f32) + (one_s @ deg) * c_s + (one_d @ deg) * c_d,
            b_fac * jnp.ones((nf,), f32) + (one_f @ deg) * c_f])
        return whx, whh, bias

    whx_a, whh_a, bias_a = fold_head(wmu, wmu2, bmu, bmu2)         # alpha head
    whx_b, whh_b, bias_b = fold_head(wsig, wsig2, bsig, bsig2)     # beta head

    wall = jnp.concatenate([we1, whx_a, whx_b], axis=0)            # (EH + 2A, D_in)
    ball = jnp.concatenate([b1_col, bias_a.reshape(A, 1),
                            bias_b.reshape(A, 1)], axis=0)         # (EH + 2A, 1)
    whh = jnp.concatenate([whh_a, whh_b], axis=0)                  # (2A, EH)
    high_col = high.reshape(A, 1)

    # ---------- per-graph input slab: graphs on lanes ----------
    xa = x.reshape(B, nnodes * ns)
    if has_edge:
        xa = jnp.concatenate(
            [xa, edge_attr.astype(f32).reshape(B, E_per * es)], axis=1)   # (B, D_in)
    B_blk = _pick_lane_block(B)
    n_blocks = -(-B // B_blk)
    B_pad = n_blocks * B_blk
    xaT = jnp.pad(xa.T, ((0, 0), (0, B_pad - B)))                  # (D_in, B_pad)

    # optional bf16 matmul operands (v6e/v7x); accumulation & elementwise stay f32
    xaT = xaT.astype(matmul_dtype)
    wall_m = wall.astype(matmul_dtype)
    whh_m = whh.astype(matmul_dtype)

    outT = pl.pallas_call(
        _make_actor_kernel(EH, A),
        out_shape=jax.ShapeDtypeStruct((A, B_pad), f32),
        grid=(n_blocks,),
        in_specs=[
            pl.BlockSpec((D_in, B_blk), lambda b: (0, b)),
            pl.BlockSpec(wall_m.shape, lambda b: (0, 0)),
            pl.BlockSpec(ball.shape, lambda b: (0, 0)),
            pl.BlockSpec(whh_m.shape, lambda b: (0, 0)),
            pl.BlockSpec(high_col.shape, lambda b: (0, 0)),
        ],
        out_specs=pl.BlockSpec((A, B_blk), lambda b: (0, b)),
        compiler_params=pltpu.CompilerParams(
            dimension_semantics=("parallel",)),
    )(xaT, wall_m, ball, whh_m, high_col)

    act = outT[:, :B].T                                            # (B, A)
    # TODO(synk): stochastic Beta sampling / log_prob and return_D branches have
    # no clean Pallas equivalent; only the deterministic path is implemented.
    return act, None


# --------------------------------------------------------------------------- #
# Pure-JAX reference (mirrors the PyTorch deterministic forward, fully general)
# --------------------------------------------------------------------------- #
def actor_forward_ref(x, edge_index, edge_attr, params, *, edges, high,
                      nnodes, num_factories, node_size, hidden_dim):
    f32 = jnp.float32
    x = x.astype(f32)
    Ntot = x.shape[0]
    B = Ntot // nnodes
    nf = num_factories

    x_i = x[edge_index[0]]
    x_j = x[edge_index[1]]
    pieces = [x_i, x_j]
    if edge_attr is not None and edge_attr.shape[1] > 0:
        pieces.append(edge_attr.astype(f32))
    msg = jnp.concatenate(pieces, axis=1)
    h = jnp.maximum(msg @ params["w1"] + params["b1"], 0.0) @ params["w2"] + params["b2"]
    conv = jax.ops.segment_sum(h, edge_index[0], num_segments=Ntot)

    x_pp = jnp.concatenate([x, conv], axis=1).reshape(B, nnodes, node_size + hidden_dim)
    ef = jnp.concatenate([x_pp[:, edges[:, 0], :], x_pp[:, edges[:, 1], :]], axis=2)

    alpha = jax.nn.softplus((ef @ params["wmu"] + params["bmu"] + 1e-20))[..., 0]
    beta = jax.nn.softplus((ef @ params["wsig"] + params["bsig"] + 1e-20))[..., 0]
    fac = x_pp[:, -nf:, :]
    alpha2 = jax.nn.softplus((fac @ params["wmu2"] + params["bmu2"])[..., 0] + 1e-20)
    beta2 = jax.nn.softplus((fac @ params["wsig2"] + params["bsig2"])[..., 0] + 1e-20)

    alpha = alpha + 1e-20
    beta = beta + 1e-20
    dis = (alpha / (alpha + beta)) * high[:-nf]
    alpha2 = alpha2 + 1e-20
    beta2 = beta2 + 1e-20
    order = (alpha2 / (alpha2 + beta2)) * high[-nf:]
    return jnp.concatenate([dis, order], axis=-1), None


# --------------------------------------------------------------------------- #
# Deterministic parameter init + example runs
# --------------------------------------------------------------------------- #
def init_params(key, node_size, edge_size, hidden_dim, out_channels):
    F = node_size + hidden_dim
    ks = jax.random.split(key, 6)
    sc = 0.3

    def lin(k, fin, fout):
        kw, kb = jax.random.split(k)
        return (sc * jax.random.normal(kw, (fin, fout), jnp.float32),
                sc * jax.random.normal(kb, (1, fout), jnp.float32))

    w1, b1 = lin(ks[0], 2 * node_size + edge_size, hidden_dim)
    w2, b2 = lin(ks[1], hidden_dim, hidden_dim)
    wmu, bmu = lin(ks[2], 2 * F, out_channels)
    wsig, bsig = lin(ks[3], 2 * F, out_channels)
    wmu2, bmu2 = lin(ks[4], F, out_channels)
    wsig2, bsig2 = lin(ks[5], F, out_channels)
    return dict(w1=w1, b1=b1, w2=w2, b2=b2,
                wmu=wmu, bmu=bmu, wsig=wsig, bsig=bsig,
                wmu2=wmu2, bmu2=bmu2, wsig2=wsig2, bsig2=bsig2)


def run_case(*, node_size, edge_size, hidden_dim, nnodes, num_factories, B,
             per_graph_edges, head_edges, high_vals, seed):
    key = jax.random.PRNGKey(seed)
    kx, ke, kp = jax.random.split(key, 3)
    Ntot = B * nnodes

    x = jax.random.normal(kx, (Ntot, node_size), jnp.float32)

    per_graph = np.asarray(per_graph_edges, dtype=np.int32)
    edge_index = jnp.asarray(
        np.concatenate([per_graph + b * nnodes for b in range(B)], axis=1))
    E_total = edge_index.shape[1]
    if edge_size > 0:
        edge_attr = jax.random.normal(ke, (E_total, edge_size), jnp.float32)
    else:
        edge_attr = jnp.zeros((E_total, edge_size), jnp.float32)

    edges = jnp.asarray(np.asarray(head_edges, dtype=np.int32))
    high = jnp.asarray(np.asarray(high_vals, dtype=np.float32))
    params = init_params(kp, node_size, edge_size, hidden_dim, 1)

    kw = dict(edges=edges, high=high, nnodes=nnodes, num_factories=num_factories,
              node_size=node_size, hidden_dim=hidden_dim)
    act, log_prob = actor_forward_pallas(x, edge_index, edge_attr, params, **kw)
    act = jax.block_until_ready(act)

    act_ref, _ = actor_forward_ref(x, edge_index, edge_attr, params, **kw)
    # Everything is exact f32 (no approx reciprocal); only summation-order
    # differences from the weight folding remain.
    np.testing.assert_allclose(np.asarray(act), np.asarray(act_ref),
                               rtol=1e-3, atol=1e-4)
    assert act.shape == (B, edges.shape[0] + num_factories)
    assert log_prob is None


if __name__ == "__main__":
    # Case 1: Actor defaults (node_size=4, edge_size=0, hidden=32, nnodes=4, nf=3)
    run_case(node_size=4, edge_size=0, hidden_dim=32, nnodes=4, num_factories=3,
             B=2,
             per_graph_edges=[[0, 0, 0, 1, 2, 3],
                              [1, 2, 3, 0, 0, 0]],
             head_edges=[[0, 1], [0, 2], [0, 3]],
             high_vals=[10.0, 10.0, 10.0, 5.0, 5.0, 5.0],
             seed=0)

    # Case 2: with edge attributes and a different topology / factory count
    run_case(node_size=4, edge_size=2, hidden_dim=32, nnodes=5, num_factories=2,
             B=3,
             per_graph_edges=[[0, 0, 0, 0, 1, 2, 3, 4],
                              [1, 2, 3, 4, 0, 0, 0, 0]],
             head_edges=[[0, 1], [0, 2], [0, 3], [0, 4]],
             high_vals=[10.0, 10.0, 10.0, 10.0, 5.0, 5.0],
             seed=1)

    # Case 3: larger batch -> multi-block grid (2 steps) + lane padding path
    run_case(node_size=4, edge_size=2, hidden_dim=32, nnodes=5, num_factories=2,
             B=200,
             per_graph_edges=[[0, 0, 0, 0, 1, 2, 3, 4],
                              [1, 2, 3, 4, 0, 0, 0, 0]],
             head_edges=[[0, 1], [0, 2], [0, 3], [0, 4]],
             high_vals=[10.0, 10.0, 10.0, 10.0, 5.0, 5.0],
             seed=2)

    print("KERNEL_OK")
</pallas_src>

<mosaic_0001>
module attributes {stable_mosaic.version = 11 : i64} {
  func.func @kernel(%arg0: i32, %arg1: memref<16x128xf32, #tpu.memory_space<vmem>>, %arg2: memref<204x16xf32, #tpu.memory_space<vmem>>, %arg3: memref<204x1xf32, #tpu.memory_space<vmem>>, %arg4: memref<12x192xf32, #tpu.memory_space<vmem>>, %arg5: memref<6x1xf32, #tpu.memory_space<vmem>>, %arg6: memref<6x128xf32, #tpu.memory_space<vmem>>) attributes {dimension_semantics = [#tpu.dimension_semantics<parallel>], iteration_bounds = array<i64: 1>, scalar_prefetch = 0 : i64, scratch_operands = 0 : i64, tpu.core_type = #tpu.core_type<tc>, window_params = [{transform_indices = @transform_0, window_bounds = array<i64: 16, 128>}, {pipeline_mode = #tpu.pipeline_mode<synchronous>, transform_indices = @transform_1, window_bounds = array<i64: 204, 16>}, {pipeline_mode = #tpu.pipeline_mode<synchronous>, transform_indices = @transform_2, window_bounds = array<i64: 204, 1>}, {pipeline_mode = #tpu.pipeline_mode<synchronous>, transform_indices = @transform_3, window_bounds = array<i64: 12, 192>}, {pipeline_mode = #tpu.pipeline_mode<synchronous>, transform_indices = @transform_4, window_bounds = array<i64: 6, 1>}, {transform_indices = @transform_5, window_bounds = array<i64: 6, 128>}]} {
    %c0 = arith.constant 0 : index
    %c0_0 = arith.constant 0 : index
    %0 = vector.load %arg2[%c0, %c0_0] : memref<204x16xf32, #tpu.memory_space<vmem>>, vector<204x16xf32>
    %c0_1 = arith.constant 0 : index
    %c0_2 = arith.constant 0 : index
    %1 = vector.load %arg1[%c0_1, %c0_2] : memref<16x128xf32, #tpu.memory_space<vmem>>, vector<16x128xf32>
    %cst = arith.constant dense<0.000000e+00> : vector<204x128xf32>
    %2 = tpu.matmul %0, %1, %cst {dimension_numbers = #tpu.dot_dimension_numbers<[1], [0], [0], [1], [0, 0, 1, 1], [], []>} : vector<204x16xf32>, vector<16x128xf32>, vector<204x128xf32> -> vector<204x128xf32>
    %c0_3 = arith.constant 0 : index
    %c0_4 = arith.constant 0 : index
    %3 = vector.load %arg3[%c0_3, %c0_4] : memref<204x1xf32, #tpu.memory_space<vmem>>, vector<204x1xf32>
    %4 = vector.broadcast %3 : vector<204x1xf32> to vector<204x128xf32>
    %5 = arith.addf %2, %4 : vector<204x128xf32>
    %6 = vector.extract_strided_slice %5 {offsets = [0, 0], sizes = [192, 128], strides = [1, 1]} : vector<204x128xf32> to vector<192x128xf32>
    %cst_5 = arith.constant 0.000000e+00 : f32
    %7 = vector.broadcast %cst_5 : f32 to vector<192x128xf32>
    %8 = arith.maximumf %6, %7 : vector<192x128xf32>
    %9 = vector.extract_strided_slice %5 {offsets = [192, 0], sizes = [12, 128], strides = [1, 1]} : vector<204x128xf32> to vector<12x128xf32>
    %c0_6 = arith.constant 0 : index
    %c0_7 = arith.constant 0 : index
    %10 = vector.load %arg4[%c0_6, %c0_7] : memref<12x192xf32, #tpu.memory_space<vmem>>, vector<12x192xf32>
    %cst_8 = arith.constant dense<0.000000e+00> : vector<12x128xf32>
    %11 = tpu.matmul %10, %8, %cst_8 {dimension_numbers = #tpu.dot_dimension_numbers<[1], [0], [0], [1], [0, 0, 1, 1], [], []>} : vector<12x192xf32>, vector<192x128xf32>, vector<12x128xf32> -> vector<12x128xf32>
    %12 = arith.addf %9, %11 : vector<12x128xf32>
    %13 = vector.extract_strided_slice %12 {offsets = [0, 0], sizes = [6, 128], strides = [1, 1]} : vector<12x128xf32> to vector<6x128xf32>
    %cst_9 = arith.constant 9.99999968E-21 : f32
    %14 = vector.broadcast %cst_9 : f32 to vector<6x128xf32>
    %15 = arith.addf %13, %14 : vector<6x128xf32>
    %cst_10 = arith.constant 0.000000e+00 : f32
    %16 = vector.broadcast %cst_10 : f32 to vector<6x128xf32>
    %17 = arith.maximumf %15, %16 : vector<6x128xf32>
    %18 = vector.broadcast %cst_10 : f32 to vector<6x128xf32>
    %19 = arith.subf %15, %18 : vector<6x128xf32>
    %20 = arith.cmpf one, %19, %19 : vector<6x128xf32>
    %21 = vector.broadcast %cst_10 : f32 to vector<6x128xf32>
    %22 = arith.addf %15, %21 : vector<6x128xf32>
    %23 = math.absf %19 : vector<6x128xf32>
    %cst_11 = arith.constant 0.000000e+00 : f32
    %24 = vector.broadcast %cst_11 : f32 to vector<6x128xf32>
    %25 = arith.subf %24, %23 : vector<6x128xf32>
    %26 = math.exp %25 : vector<6x128xf32>
    %27 = math.log1p %26 : vector<6x128xf32>
    %28 = arith.addf %17, %27 : vector<6x128xf32>
    %29 = arith.select %20, %22, %28 : vector<6x128xi1>, vector<6x128xf32>
    %cst_12 = arith.constant 9.99999968E-21 : f32
    %30 = vector.broadcast %cst_12 : f32 to vector<6x128xf32>
    %31 = arith.addf %29, %30 : vector<6x128xf32>
    %32 = vector.extract_strided_slice %12 {offsets = [6, 0], sizes = [6, 128], strides = [1, 1]} : vector<12x128xf32> to vector<6x128xf32>
    %cst_13 = arith.constant 9.99999968E-21 : f32
    %33 = vector.broadcast %cst_13 : f32 to vector<6x128xf32>
    %34 = arith.addf %32, %33 : vector<6x128xf32>
    %cst_14 = arith.constant 0.000000e+00 : f32
    %35 = vector.broadcast %cst_14 : f32 to vector<6x128xf32>
    %36 = arith.maximumf %34, %35 : vector<6x128xf32>
    %37 = vector.broadcast %cst_14 : f32 to vector<6x128xf32>
    %38 = arith.subf %34, %37 : vector<6x128xf32>
    %39 = arith.cmpf one, %38, %38 : vector<6x128xf32>
    %40 = vector.broadcast %cst_14 : f32 to vector<6x128xf32>
    %41 = arith.addf %34, %40 : vector<6x128xf32>
    %42 = math.absf %38 : vector<6x128xf32>
    %cst_15 = arith.constant 0.000000e+00 : f32
    %43 = vector.broadcast %cst_15 : f32 to vector<6x128xf32>
    %44 = arith.subf %43, %42 : vector<6x128xf32>
    %45 = math.exp %44 : vector<6x128xf32>
    %46 = math.log1p %45 : vector<6x128xf32>
    %47 = arith.addf %36, %46 : vector<6x128xf32>
    %48 = arith.select %39, %41, %47 : vector<6x128xi1>, vector<6x128xf32>
    %cst_16 = arith.constant 9.99999968E-21 : f32
    %49 = vector.broadcast %cst_16 : f32 to vector<6x128xf32>
    %50 = arith.addf %48, %49 : vector<6x128xf32>
    %51 = arith.addf %31, %50 : vector<6x128xf32>
    %52 = arith.divf %31, %51 : vector<6x128xf32>
    %c0_17 = arith.constant 0 : index
    %c0_18 = arith.constant 0 : index
    %53 = vector.load %arg5[%c0_17, %c0_18] : memref<6x1xf32, #tpu.memory_space<vmem>>, vector<6x1xf32>
    %54 = vector.broadcast %53 : vector<6x1xf32> to vector<6x128xf32>
    %55 = arith.mulf %52, %54 : vector<6x128xf32>
    %c0_19 = arith.constant 0 : index
    %c0_20 = arith.constant 0 : index
    %56 = vector.load %arg6[%c0_19, %c0_20] : memref<6x128xf32, #tpu.memory_space<vmem>>, vector<6x128xf32>
    tpu.vector_store %arg6[%c0_19, %c0_20], %55 {strides = array<i32>} : memref<6x128xf32, #tpu.memory_space<vmem>>, vector<6x128xf32>,
    return
  }
  func.func @transform_0(%arg0: i32) -> (i32, i32) {
    %c0_i32 = arith.constant 0 : i32
    %c0_i32_0 = arith.constant 0 : i32
    return %c0_i32, %arg0 : i32, i32
  }
  func.func @transform_1(%arg0: i32) -> (i32, i32) {
    %c0_i32 = arith.constant 0 : i32
    %c0_i32_0 = arith.constant 0 : i32
    %c0_i32_1 = arith.constant 0 : i32
    return %c0_i32, %c0_i32_0 : i32, i32
  }
  func.func @transform_2(%arg0: i32) -> (i32, i32) {
    %c0_i32 = arith.constant 0 : i32
    %c0_i32_0 = arith.constant 0 : i32
    %c0_i32_1 = arith.constant 0 : i32
    return %c0_i32, %c0_i32_0 : i32, i32
  }
  func.func @transform_3(%arg0: i32) -> (i32, i32) {
    %c0_i32 = arith.constant 0 : i32
    %c0_i32_0 = arith.constant 0 : i32
    %c0_i32_1 = arith.constant 0 : i32
    return %c0_i32, %c0_i32_0 : i32, i32
  }
  func.func @transform_4(%arg0: i32) -> (i32, i32) {
    %c0_i32 = arith.constant 0 : i32
    %c0_i32_0 = arith.constant 0 : i32
    %c0_i32_1 = arith.constant 0 : i32
    return %c0_i32, %c0_i32_0 : i32, i32
  }
  func.func @transform_5(%arg0: i32) -> (i32, i32) {
    %c0_i32 = arith.constant 0 : i32
    %c0_i32_0 = arith.constant 0 : i32
    return %c0_i32, %arg0 : i32, i32
  }
}

</mosaic_0001>

<bundles_post_ra>
// kernel: tpu_custom_call.1
= control target key start
LH: loop header
LB: loop body
LE: loop exit
PB: predicated region body
PF: predicated region fallthrough
CT: control target
= control target key end

     0   :  { %v624_v1 = vmov 0   ;;  %vm205_vm0 = vcmask 130048   ;;  %s882_s0 = inlined_call_operand.vmem [shape: f32[16,128], index: 0, kind: input, shape index: {}]   ;;  %s883_s1 = inlined_call_operand.vmem [shape: f32[204,16], index: 1, kind: input, shape index: {}]   ;;  %s884_s2 = inlined_call_operand.vmem [shape: f32[204,1], index: 2, kind: input, shape index: {}]   ;;  %s885_s3 = inlined_call_operand.vmem [shape: f32[12,192], index: 3, kind: input, shape index: {}]   ;;  %s886_s4 = inlined_call_operand.vmem [shape: f32[6,1], index: 4, kind: input, shape index: {}]   ;;  %s887_s5 = inlined_call_operand.hbm [shape: f32[6,128], index: 5, kind: output, shape index: {}]  }
   0x1   :  { %v48_v0 = vld [vmem:[%s882_s0 + $0x8] sm:$0xff]  ;;  %587 = vset.pattern.permute.xlu2 %v624_v1  ;;  %586 = vset.pattern.permute.xlu1 %v624_v1  ;;  %v64_v2 = vld [vmem:[%s884_s2 + $0x78] sm:$0xff]  ;;  %v47_v5 = vld [vmem:[%s882_s0] sm:$0xff] }
   0x2   :  { %v62_v3 = vld [vmem:[%s884_s2 + $0x68] sm:$0xff]  ;;  %585 = vset.pattern.permute.xlu0 %v624_v1  ;;  %298 = vmatpush.msra.mxu0 %v48_v0  ;;  %v60_v4 = vld [vmem:[%s884_s2 + $0x58] sm:$0xff]  ;;  %v21_v6 = vld [vmem:[%s883_s1] sm:$0xff] }
   0x3   :  { %577 = vmatpush.msra.mxu1 %v48_v0  ;;  %579 = vmatpush.msra.mxu3 %v48_v0  ;;  %v30_v7 = vld [vmem:[%s883_s1 + $0x48] sm:$0xff]  ;;  %v36_v9 = vld [vmem:[%s883_s1 + $0x78] sm:$0xff]  ;;  %v63_v10 = vld [vmem:[%s884_s2 + $0x70] sm:$0xff] }
   0x4   :  { %152 = vperm.xlu0 %585, %v64_v2   ;;  %142 = vperm.xlu1 %586, %v62_v3   ;;  %v38_v8 = vld [vmem:[%s883_s1 + $0x88] sm:$0xff]  ;;  %v61_v11 = vld [vmem:[%s884_s2 + $0x60] sm:$0xff]  ;;  %v59_v12 = vld [vmem:[%s884_s2 + $0x50] sm:$0xff] }
   0x5   :  { %132 = vperm.xlu2 %587, %v60_v4   ;;  %299 = vmatpush.msra.mxu0 %v47_v5 }
   0x6   :  { %580 = vmatpush.msra.mxu1 %v47_v5  ;;  %582 = vmatpush.msra.mxu3 %v47_v5 }
   0x7   :  { %549 = vmatmul.msk.f32.vlgmr.msra.gmra.mxu0 %vm205_vm0, %v21_v6  ;;  %558 = vmatmul.msk.f32.vlgmr.msra.gmra.mxu1 %vm205_vm0, %v30_v7 }
   0x8   :  { %566 = vmatmul.msk.f32.vlgmr.msra.gmra.mxu3 %vm205_vm0, %v38_v8  ;;  %578 = vmatpush.msra.mxu2 %v48_v0 }
   0xa   :  { %581 = vmatpush.msra.mxu2 %v47_v5 }
   0xb   :  { %564 = vmatmul.msk.f32.vlgmr.msra.gmra.mxu2 %vm205_vm0, %v36_v9 }
   0xc   :  { %10 = vsyncpa [#allocation3], 0  ;;  %147 = vperm.xlu0 %585, %v63_v10   ;;  %137 = vperm.xlu1 %586, %v61_v11   ;;  %v22_v13 = vld [vmem:[%s883_s1 + $0x8] sm:$0xff]  ;;  %v31_v14 = vld [vmem:[%s883_s1 + $0x50] sm:$0xff]  ;;  %vm407_vm1 = vcmask 523264   ;;  %vm504_vm6 = vcmask 1041408  }
   0xd   :  { %127 = vperm.xlu2 %587, %v59_v12   ;;  %v39_v15 = vld [vmem:[%s883_s1 + $0x90] sm:$0xff]  ;;  %v37_v16 = vld [vmem:[%s883_s1 + $0x80] sm:$0xff]  ;;  %v72_v17 = vld [vmem:[%s884_s2 + $0xb8] sm:$0xff]  ;;  %s540_s7 = sshll.u32 %s887_s5, 4  ;;  %s541_s7 = int_to_ptr.hbm [resolvable:$true] %s540_s7 }
   0xe   :  { %v58_v18 = vld [vmem:[%s884_s2 + $0x48] sm:$0xff]  ;;  %v71_v19 = vld [vmem:[%s884_s2 + $0xb0] sm:$0xff]  ;;  %v32_v21 = vld [vmem:[%s883_s1 + $0x58] sm:$0xff] }
   0xf   :  { %550 = vmatmul.msk.f32.gmra.mxu0 %vm205_vm0, %v22_v13  ;;  %559 = vmatmul.msk.f32.gmra.mxu1 %vm205_vm0, %v31_v14  ;;  %v23_v20 = vld [vmem:[%s883_s1 + $0x10] sm:$0xff]  ;;  %v40_v22 = vld [vmem:[%s883_s1 + $0x98] sm:$0xff]  ;;  %v70_v23 = vld [vmem:[%s884_s2 + $0xa8] sm:$0xff] }
  0x10   :  { %567 = vmatmul.msk.f32.gmra.mxu3 %vm205_vm0, %v39_v15  ;;  %v57_v24 = vld [vmem:[%s884_s2 + $0x40] sm:$0xff]  ;;  %v56_v25 = vld [vmem:[%s884_s2 + $0x38] sm:$0xff]  ;;  %v55_v30 = vld [vmem:[%s884_s2 + $0x30] sm:$0xff] }
  0x11   :  { %v24_v26 = vld [vmem:[%s883_s1 + $0x18] sm:$0xff]  ;;  %v33_v27 = vld [vmem:[%s883_s1 + $0x60] sm:$0xff]  ;;  %v34_v33 = vld [vmem:[%s883_s1 + $0x68] sm:$0xff] }
  0x12   :  { %v41_v28 = vld [vmem:[%s883_s1 + $0xa0] sm:$0xff]  ;;  %v68_v31 = vld [vmem:[%s884_s2 + $0x98] sm:$0xff]  ;;  %v42_v34 = vld [vmem:[%s883_s1 + $0xa8] sm:$0xff] }
  0x13   :  { %565 = vmatmul.msk.f32.gmra.mxu2 %vm205_vm0, %v37_v16  ;;  %v69_v29 = vld [vmem:[%s884_s2 + $0xa0] sm:$0xff]  ;;  %v67_v35 = vld [vmem:[%s884_s2 + $0x90] sm:$0xff]  ;;  %v54_v36 = vld [vmem:[%s884_s2 + $0x28] sm:$0xff] }
  0x14   :  { %192 = vperm.xlu0 %585, %v72_v17   ;;  %122 = vperm.xlu1 %586, %v58_v18   ;;  %v25_v32 = vld [vmem:[%s883_s1 + $0x20] sm:$0xff]  ;;  %v26_v38 = vld [vmem:[%s883_s1 + $0x28] sm:$0xff]  ;;  %v35_v39 = vld [vmem:[%s883_s1 + $0x70] sm:$0xff] }
  0x15   :  { %187 = vperm.xlu2 %587, %v71_v19   ;;  %v53_v37 = vld [vmem:[%s884_s2 + $0x20] sm:$0xff]  ;;  %v43_v40 = vld [vmem:[%s883_s1 + $0xb0] sm:$0xff]  ;;  %v66_v41 = vld [vmem:[%s884_s2 + $0x88] sm:$0xff] }
  0x16   :  { %v52_v42 = vld [vmem:[%s884_s2 + $0x18] sm:$0xff]  ;;  %v65_v43 = vld [vmem:[%s884_s2 + $0x80] sm:$0xff]  ;;  %v27_v44 = vld [vmem:[%s883_s1 + $0x30] sm:$0xff] }
  0x17   :  { %551 = vmatmul.msk.f32.gmra.mxu0 %vm205_vm0, %v23_v20  ;;  %560 = vmatmul.msk.f32.gmra.mxu1 %vm205_vm0, %v32_v21  ;;  %v44_v45 = vld [vmem:[%s883_s1 + $0xb8] sm:$0xff]  ;;  %v51_v46 = vld [vmem:[%s884_s2 + $0x10] sm:$0xff]  ;;  %v50_v47 = vld [vmem:[%s884_s2 + $0x8] sm:$0xff] }
  0x18   :  { %568 = vmatmul.msk.f32.gmra.mxu3 %vm205_vm0, %v40_v22  ;;  %v49_v48 = vld [vmem:[%s884_s2] sm:$0xff]  ;;  %v28_v49 = vld [vmem:[%s883_s1 + $0x38] sm:$0xff]  ;;  %v74_v52 = vld [vmem:[%s884_s2 + $0xc8] sm:$0xf] }
  0x19   :  { %v45_v50 = vld [vmem:[%s883_s1 + $0xc0] sm:$0xff]  ;;  %v46_v55 = vld [vmem:[%s883_s1 + $0xc8] sm:$0xf] }
  0x1a   :  { %v73_v51 = vld [vmem:[%s884_s2 + $0xc0] sm:$0xff] }
  0x1b   :  { %v525_v53 = vld [vmem:[%s886_s4] sm:$0x3f] }
  0x1c   :  { %182 = vperm.xlu1 %586, %v70_v23   ;;  %117 = vperm.xlu0 %585, %v57_v24   ;;  %v29_v54 = vld [vmem:[%s883_s1 + $0x40] sm:$0xff] }
  0x1d   :  { %112 = vperm.xlu2 %587, %v56_v25  }
  0x1f   :  { %552 = vmatmul.msk.f32.gmra.mxu0 %vm205_vm0, %v24_v26  ;;  %561 = vmatmul.msk.f32.gmra.mxu1 %vm205_vm0, %v33_v27 }
  0x20   :  { %569 = vmatmul.msk.f32.gmra.mxu3 %vm205_vm0, %v41_v28 }
  0x24   :  { %177 = vperm.xlu0 %585, %v69_v29   ;;  %107 = vperm.xlu1 %586, %v55_v30  }
  0x25   :  { %172 = vperm.xlu2 %587, %v68_v31  }
  0x27   :  { %553 = vmatmul.msk.f32.gmra.mxu0 %vm205_vm0, %v25_v32  ;;  %562 = vmatmul.msk.f32.gmra.mxu1 %vm205_vm0, %v34_v33 }
  0x28   :  { %570 = vmatmul.msk.f32.gmra.mxu3 %vm205_vm0, %v42_v34 }
  0x2c   :  { %167 = vperm.xlu1 %586, %v67_v35   ;;  %102 = vperm.xlu0 %585, %v54_v36  }
  0x2d   :  { %97 = vperm.xlu2 %587, %v53_v37  }
  0x2f   :  { %554 = vmatmul.msk.f32.gmra.mxu0 %vm205_vm0, %v26_v38  ;;  %563 = vmatmul.msk.f32.gmra.mxu1 %vm205_vm0, %v35_v39 }
  0x30   :  { %571 = vmatmul.msk.f32.gmra.mxu3 %vm205_vm0, %v43_v40 }
  0x34   :  { %162 = vperm.xlu0 %585, %v66_v41   ;;  %92 = vperm.xlu1 %586, %v52_v42  }
  0x35   :  { %157 = vperm.xlu2 %587, %v65_v43  }
  0x37   :  { %555 = vmatmul.msk.f32.gmra.mxu0 %vm205_vm0, %v27_v44 }
  0x38   :  { %572 = vmatmul.msk.f32.gmra.mxu3 %vm205_vm0, %v44_v45 }
  0x3c   :  { %87 = vperm.xlu0 %585, %v51_v46   ;;  %82 = vperm.xlu1 %586, %v50_v47  }
  0x3d   :  { %77 = vperm.xlu2 %587, %v49_v48  }
  0x3f   :  { %556 = vmatmul.msk.f32.gmra.mxu0 %vm205_vm0, %v28_v49 }
  0x40   :  { %573 = vmatmul.msk.f32.gmra.mxu3 %vm205_vm0, %v45_v50 }
  0x44   :  { %197 = vperm.xlu0 %585, %v73_v51   ;;  %202 = vperm.xlu1 %586, %v74_v52  }
  0x45   :  { %528 = vperm.xlu2 %587, %v525_v53  }
  0x47   :  { %557 = vmatmul.msk.f32.gmra.mxu0 %vm205_vm0, %v29_v54 }
  0x48   :  { %574 = vmatmul.msk.f32.gmra.mxu3 %vm205_vm0, %v46_v55 }
  0x5f   :  { %v133_v60 = vpop.permute.xlu2 %132 }
  0x67   :  { %v128_v5 = vpop.permute.xlu2 %127 }
  0x6f   :  { %v188_v14 = vpop.permute.xlu2 %187 }
  0x76   :  { %v153_v58 = vpop.permute.xlu0 %152  ;;  %v143_v59 = vpop.permute.xlu1 %142 }
  0x77   :  { %v113_v20 = vpop.permute.xlu2 %112 }
  0x7e   :  { %v148_v0 = vpop.permute.xlu0 %147  ;;  %v138_v3 = vpop.permute.xlu1 %137 }
  0x7f   :  { %v173_v32 = vpop.permute.xlu2 %172 }
  0x84   :  { %v847_v56 = vpop.f32.mrf.mxu0  ;;  %v328_v57 = vpop.f32.mrf.mxu1 }
  0x86   :  { %v193_v9 = vpop.permute.xlu0 %192  ;;  %v123_v10 = vpop.permute.xlu1 %122 }
  0x87   :  { %v329_v37 = vadd.f32 %v328_v57, %v123_v10  ;;  %v98_v44 = vpop.permute.xlu2 %97 }
  0x89   :  { %v388_v41 = vmax.f32 %v329_v37, 0.0 }
  0x8b   :  { %v849_v61 = vpop.f32.mrf.mxu3 }
  0x8c   :  { %v851_v62 = vpop.f32.mrf.mxu0  ;;  %v331_v63 = vpop.f32.mrf.mxu1 }
  0x8d   :  { %v332_v33 = vadd.f32 %v331_v63, %v128_v5 }
  0x8e   :  { %v346_v1 = vpop.f32.mrf.mxu2  ;;  %v118_v15 = vpop.permute.xlu0 %117 }
  0x8f   :  { %v347_v2 = vadd.f32 %v346_v1, %v153_v58  ;;  %v183_v19 = vpop.permute.xlu1 %182  ;;  %v389_v39 = vmax.f32 %v332_v33, 0.0  ;;  %v158_v1 = vpop.permute.xlu2 %157 }
  0x91   :  { %v394_v4 = vmax.f32 %v347_v2, 0.0 }
  0x93   :  { %v355_v6 = vpop.f32.mrf.mxu3  ;;  %414 = vmatpush.msrb.mxu1 %v394_v4 }
  0x94   :  { %v853_v7 = vpop.f32.mrf.mxu0  ;;  %v334_v8 = vpop.f32.mrf.mxu1 }
  0x95   :  { %v335_v30 = vadd.f32 %v334_v8, %v133_v60 }
  0x96   :  { %v178_v26 = vpop.permute.xlu0 %177  ;;  %v349_v60 = vpop.f32.mrf.mxu2 }
  0x97   :  { %v108_v29 = vpop.permute.xlu1 %107  ;;  %v390_v38 = vmax.f32 %v335_v30, 0.0 }
  0x9b   :  { %v358_v11 = vpop.f32.mrf.mxu3 }
  0x9c   :  { %v855_v12 = vpop.f32.mrf.mxu0  ;;  %v337_v13 = vpop.f32.mrf.mxu1  ;;  %v359_v52 = vadd.f32 %v358_v11, %v173_v32 }
  0x9d   :  { %v338_v27 = vadd.f32 %v337_v13, %v138_v3 }
  0x9e   :  { %v103_v40 = vpop.permute.xlu0 %102  ;;  %v398_v2 = vmax.f32 %v359_v52, 0.0 }
  0x9f   :  { %v391_v34 = vmax.f32 %v338_v27, 0.0  ;;  %v168_v42 = vpop.permute.xlu1 %167 }
  0xa0   :  { %v356_v55 = vadd.f32 %v355_v6, %v168_v42 }
  0xa2   :  { %v397_v8 = vmax.f32 %v356_v55, 0.0 }
  0xa3   :  { %v361_v16 = vpop.f32.mrf.mxu3 }
  0xa4   :  { %v857_v17 = vpop.f32.mrf.mxu0  ;;  %v340_v18 = vpop.f32.mrf.mxu1  ;;  %v362_v50 = vadd.f32 %v361_v16, %v178_v26 }
  0xa5   :  { %v341_v24 = vadd.f32 %v340_v18, %v143_v59  ;;  %v314_v13 = vadd.f32 %v857_v17, %v98_v44  ;;  %v78_v17 = vpop.permute.xlu2 %77 }
  0xa6   :  { %v163_v53 = vpop.permute.xlu0 %162  ;;  %v399_v57 = vmax.f32 %v362_v50, 0.0 }
  0xa7   :  { %v392_v31 = vmax.f32 %v341_v24, 0.0  ;;  %v93_v58 = vpop.permute.xlu1 %92  ;;  %v353_v3 = vadd.f32 %v849_v61, %v163_v53  ;;  %v404_v61 = vld [vmem:[%s885_s3 + $0x8] sm:$0xff] }
  0xa8   :  { %v311_v18 = vadd.f32 %v855_v12, %v93_v58  ;;  %v406_v12 = vld [vmem:[%s885_s3 + $0x18] sm:$0xf] }
  0xa9   :  { %v396_v6 = vmax.f32 %v353_v3, 0.0 }
  0xab   :  { %v364_v21 = vpop.f32.mrf.mxu3 }
  0xac   :  { %v316_v22 = vpop.f32.mrf.mxu0  ;;  %v343_v23 = vpop.f32.mrf.mxu1  ;;  %v365_v48 = vadd.f32 %v364_v21, %v183_v19  ;;  %v383_v21 = vmax.f32 %v314_v13, 0.0 }
  0xad   :  { %v344_v25 = vadd.f32 %v343_v23, %v148_v0  ;;  %v317_v10 = vadd.f32 %v316_v22, %v103_v40  ;;  %v382_v23 = vmax.f32 %v311_v18, 0.0 }
  0xae   :  { %v400_v54 = vmax.f32 %v365_v48, 0.0  ;;  %v88_v16 = vpop.permute.xlu0 %87 }
  0xaf   :  { %v393_v28 = vmax.f32 %v344_v25, 0.0  ;;  %v384_v19 = vmax.f32 %v317_v10, 0.0  ;;  %v308_v22 = vadd.f32 %v853_v7, %v88_v16  ;;  %v302_v25 = vadd.f32 %v847_v56, %v78_v17  ;;  %v403_v7 = vld [vmem:[%s885_s3] sm:$0xff]  ;;  %v405_v56 = vld [vmem:[%s885_s3 + $0x10] sm:$0xf]  ;;  %s625_s3 = smov [#allocation2]  }
  0xb0   :  { %s538_s29 = sshll.u32 %s625_s3, 4  ;;  %s539_s29 = int_to_ptr.vmem [resolvable:$true] %s538_s29 }
  0xb1   :  { %415 = vmatpush.msrb.mxu1 %v393_v28  ;;  %v381_v26 = vmax.f32 %v308_v22, 0.0  ;;  %v379_v28 = vmax.f32 %v302_v25, 0.0 }
  0xb3   :  { %v367_v35 = vpop.f32.mrf.mxu3  ;;  %416 = vmatpush.msrb.mxu1 %v392_v31 }
  0xb4   :  { %v319_v36 = vpop.f32.mrf.mxu0  ;;  %v368_v45 = vadd.f32 %v367_v35, %v188_v14 }
  0xb5   :  { %417 = vmatpush.msrb.mxu1 %v391_v34  ;;  %v320_v4 = vadd.f32 %v319_v36, %v108_v29 }
  0xb6   :  { %v401_v51 = vmax.f32 %v368_v45, 0.0  ;;  %v198_v30 = vpop.permute.xlu0 %197 }
  0xb7   :  { %418 = vmatpush.msrb.mxu1 %v390_v38  ;;  %v385_v14 = vmax.f32 %v320_v4, 0.0 }
  0xb9   :  { %419 = vmatpush.msrb.mxu1 %v389_v39 }
  0xbb   :  { %v370_v43 = vpop.f32.mrf.mxu3  ;;  %420 = vmatpush.msrb.mxu1 %v388_v41 }
  0xbc   :  { %v371_v46 = vadd.f32 %v370_v43, %v193_v9  ;;  %v322_v47 = vpop.f32.mrf.mxu0  ;;  %v350_v9 = vadd.f32 %v349_v60, %v158_v1 }
  0xbd   :  { %v323_v63 = vadd.f32 %v322_v47, %v113_v20  ;;  %v83_v20 = vpop.permute.xlu1 %82 }
  0xbe   :  { %v402_v49 = vmax.f32 %v371_v46, 0.0  ;;  %v305_v24 = vadd.f32 %v851_v62, %v83_v20 }
  0xbf   :  { %v386_v11 = vmax.f32 %v323_v63, 0.0 }
  0xc0   :  { %445 = vmatpush.msrb.mxu2 %v402_v49  ;;  %v380_v27 = vmax.f32 %v305_v24, 0.0 }
  0xc2   :  { %446 = vmatpush.msrb.mxu2 %v401_v51 }
  0xc3   :  { %v373_v62 = vpop.f32.mrf.mxu3 }
  0xc4   :  { %447 = vmatpush.msrb.mxu2 %v400_v54  ;;  %v325_v59 = vpop.f32.mrf.mxu0  ;;  %v374_v32 = vadd.f32 %v373_v62, %v198_v30 }
  0xc5   :  { %v326_v0 = vadd.f32 %v325_v59, %v118_v15  ;;  %v395_v15 = vmax.f32 %v350_v9, 0.0  ;;  %v203_v39 = vpop.permute.xlu1 %202 }
  0xc6   :  { %448 = vmatpush.msrb.mxu2 %v399_v57 }
  0xc7   :  { %v387_v5 = vmax.f32 %v326_v0, 0.0 }
  0xc8   :  { %449 = vmatpush.msrb.mxu2 %v398_v2 }
  0xc9   :  { %421 = vmatpush.msrb.mxu1 %v387_v5 }
  0xca   :  { %450 = vmatpush.msrb.mxu2 %v397_v8 }
  0xcb   :  { %422 = vmatpush.msrb.mxu1 %v386_v11  ;;  %v376_v36 = vpop.f32.mrf.mxu3 }
  0xcc   :  { %451 = vmatpush.msrb.mxu2 %v396_v6  ;;  %v377_v41 = vadd.f32 %v376_v36, %v203_v39 }
  0xcd   :  { %423 = vmatpush.msrb.mxu1 %v385_v14 }
  0xce   :  { %452 = vmatpush.msrb.mxu2 %v395_v15 }
  0xcf   :  { %424 = vmatpush.msrb.mxu1 %v384_v19  ;;  %575 = vmatmul.msk.f32.vlgmr.msrb.gmra.mxu2 %vm407_vm1, %v404_v61 }
  0xd1   :  { %425 = vmatpush.msrb.mxu1 %v383_v21 }
  0xd3   :  { %426 = vmatpush.msrb.mxu1 %v382_v23 }
  0xd5   :  { %427 = vmatpush.msrb.mxu1 %v381_v26 }
  0xd7   :  { %428 = vmatpush.msrb.mxu1 %v380_v27  ;;  %576 = vmatmul.msk.f32.gmra.mxu2 %vm407_vm1, %v406_v12 }
  0xd9   :  { %429 = vmatpush.msrb.mxu1 %v379_v28 }
  0xda   :  { %430 = vmatmul.f32.vlgmr.msrb.gmra.mxu1 %v403_v7 }
  0xe2   :  { %433 = vmatmul.f32.gmra.mxu1 %v405_v56  ;;  %v529_v56 = vpop.permute.xlu2 %528 }
 0x152   :  { %v454_v29 = vpop.f32.mrf.mxu2 }
 0x157   :  { %v431_v31 = vpop.f32.mrf.mxu1 }
 0x158   :  { %v455_v33 = vadd.f32 %v454_v29, %v431_v31 }
 0x15a   :  { %v460_v34 = vadd.f32 %v455_v33, %v374_v32  ;;  %v457_v37 = vpop.f32.mrf.mxu2 }
 0x15c   :  { %v462_v35 = vadd.f32 1e-20, %v460_v34 }
 0x15e   :  { %v466_v38 = vand.u32 2147483647, %v462_v35  ;;  %v463_v1 = vmax.f32 %v462_v35, 0.0  ;;  %vm464_vm3 = vcmp.ne.f32.partialorder %v462_v35, %v462_v35 }
 0x15f   :  { %v434_v40 = vpop.f32.mrf.mxu1 }
 0x160   :  { %v467_v42 = vsub.f32 0.0, %v466_v38  ;;  %v458_v43 = vadd.f32 %v457_v37, %v434_v40 }
 0x162   :  { %v468_v44 = vmul.f32 1.442695, %v467_v42  ;;  %v461_v45 = vadd.f32 %v458_v43, %v377_v41 }
 0x164   :  { %588 = vpow2.f32 %v468_v44  ;;  %v482_v46 = vadd.f32 1e-20, %v461_v45 }
 0x166   :  { %v486_v47 = vand.u32 2147483647, %v482_v46  ;;  %v483_v10 = vmax.f32 %v482_v46, 0.0  ;;  %vm484_vm5 = vcmp.ne.f32.partialorder %v482_v46, %v482_v46 }
 0x168   :  { %v487_v48 = vsub.f32 0.0, %v486_v47 }
 0x16a   :  { %v589_v49 = vpop.eup %588  ;;  %v488_v50 = vmul.f32 1.442695, %v487_v48 }
 0x16b   :  { %v470_v51 = vadd.f32 1.0, %v589_v49  ;;  %v473_v52 = vmul.f32 -0.5, %v589_v49  ;;  %v476_v54 = vand.u32 2147483647, %v589_v49 }
 0x16c   :  { %590 = vpow2.f32 %v488_v50 }
 0x16d   :  { %592 = vlog2.f32 %v470_v51  ;;  %v474_v53 = vadd.f32 1.0, %v473_v52  ;;  %vm477_vm2 = vcmp.lt.f32.partialorder %v476_v54, 0.0004427343 }
 0x16f   :  { %v475_v60 = vmul.f32 %v589_v49, %v474_v53 }
 0x172   :  { %v591_v55 = vpop.eup %590 }
 0x173   :  { %v593_v57 = vpop.eup %592  ;;  %v490_v58 = vadd.f32 1.0, %v591_v55  ;;  %v493_v63 = vmul.f32 -0.5, %v591_v55  ;;  %v496_v4 = vand.u32 2147483647, %v591_v55 }
 0x174   :  { %v472_v59 = vmul.f32 0.6931472, %v593_v57 }
 0x175   :  { %594 = vlog2.f32 %v490_v58  ;;  %v494_v2 = vadd.f32 1.0, %v493_v63  ;;  %vm497_vm4 = vcmp.lt.f32.partialorder %v496_v4, 0.0004427343 }
 0x176   :  { %v478_v0 = vsel %vm477_vm2, %v475_v60, %v472_v59 }
 0x177   :  { %v479_v3 = vadd.f32 %v478_v0, %v463_v1  ;;  %v495_v9 = vmul.f32 %v591_v55, %v494_v2 }
 0x179   :  { %v480_v11 = vsel %vm464_vm3, %v462_v35, %v479_v3 }
 0x17a   :  { %v481_v14 = vadd.f32 1e-20, %v480_v11 }
 0x17b   :  { %v595_v5 = vpop.eup %594 }
 0x17c   :  { %v492_v8 = vmul.f32 0.6931472, %v595_v5  ;;  %v505_v18 = vrot.slane %v481_v14, 6 }
 0x17e   :  { %v498_v6 = vsel %vm497_vm4, %v495_v9, %v492_v8 }
 0x17f   :  { %v499_v13 = vadd.f32 %v498_v6, %v483_v10 }
 0x181   :  { %v500_v15 = vsel %vm484_vm5, %v482_v46, %v499_v13 }
 0x182   :  { %v501_v16 = vadd.f32 1e-20, %v500_v15 }
 0x184   :  { %v506_v61 = vrot.slane %v501_v16, 6 }
 0x186   :  { %v507_v19 = vsel %vm504_vm6, %v505_v18, %v506_v61 }
 0x187   :  { %v509_v20 = vadd.f32 %v507_v19, %v481_v14 }
 0x189   :  { %596 = vrcp.f32 %v509_v20  ;;  %v521_v23 = vand.u32 2147483648, %v509_v20  ;;  %v519_v25 = vand.u32 2147483647, %v509_v20  ;;  %vm515_vm8 = vweird.f32 %v509_v20 }
 0x18b   :  { %v522_v12 = vor.u32 1.1754944e-38, %v521_v23  ;;  %vm520_vm10 = vcmp.eq.f32.partialorder %v519_v25, 8.507059e+37 }
 0x18f   :  { %v597_v21 = vpop.eup %596 }
 0x190   :  { %v511_v22 = vmul.f32 %v597_v21, %v509_v20  ;;  %vm516_vm7 = vweird.f32 %v597_v21 }
 0x191   :  { %vm517_vm9 = vmor %vm515_vm8, %vm516_vm7 }
 0x192   :  { %v512_v17 = vsub.f32 1.0, %v511_v22 }
 0x194   :  { %v513_v24 = vmul.f32 %v597_v21, %v512_v17 }
 0x196   :  { %v514_v26 = vadd.f32 %v597_v21, %v513_v24 }
 0x198   :  { %v518_v27 = vsel %vm517_vm9, %v597_v21, %v514_v26 }
 0x199   :  { %v523_v28 = vsel %vm520_vm10, %v522_v12, %v518_v27 }
 0x19a   :  { %v524_v7 = vmul.f32 %v523_v28, %v481_v14 }
 0x19c   :  { %v531_v62 = vmul.f32 %v529_v56, %v524_v7 }
 0x19e   :  { %532 = vst [vmem:[#allocation2] sm:$0x3f] %v531_v62 }
 0x19f   :  { %543 = dma.vmem_to_hbm [thread:$0]  %s539_s29, 128, %s541_s7, [#allocation3]  }
 0x1a0   :  { %622 = dma.done.wait [#allocation3], 128  }
 0x1a1   :  { %623 = vsyncadd [#allocation3], 4294967168 }
 0x1a2   :  { %548 = vsyncpa [#allocation3], 1 }

</bundles_post_ra>
